<compile_context>
chip_gen: v7x
topology: tpu7x:2x2x1
jax: 0.10.0
libtpu: 0.0.40
codegen_flags: <defaults>
</compile_context>

<pallas_src>
import jax
import jax.numpy as jnp
import numpy as np
from jax import lax
from jax.experimental import pallas as pl
from jax.experimental.pallas import tpu as pltpu

VMEM_LIMIT = 32 * 1024 * 1024  # safe explicit scoped-VMEM cap on v5e/v6e/v7x


def _compiler_params(semantics):
    return pltpu.CompilerParams(dimension_semantics=semantics,
                                vmem_limit_bytes=VMEM_LIMIT)


def _pick_tile(m, cap=256):
    """Largest row tile <= cap that divides m and keeps (8,_) sublane tiling."""
    if m <= cap:
        return m
    t = cap - (cap % 8)
    while t >= 8:
        if m % t == 0:
            return t
        t -= 8
    return m


def _bn_scale_shift(ysum, yssq, count, gamma, beta, eps):
    """Fold training-mode batch stats + (gamma, beta) into affine scale/shift."""
    mean = ysum / count
    var = jnp.maximum(yssq / count - mean * mean, 0.0)
    scale = gamma[None, :] * lax.rsqrt(var + eps)
    shift = beta[None, :] - mean * scale
    return scale, shift


# ---------------------------------------------------------------------------
# Kernel 1: plain matmul + fused per-channel sum / sum-of-squares (conv0 stem)
# ---------------------------------------------------------------------------
def _mm_stats_kernel(x_ref, w_ref, y_ref, sum_ref, ssq_ref, sacc, qacc):
    i = pl.program_id(0)

    @pl.when(i == 0)
    def _init():
        sacc[...] = jnp.zeros_like(sacc)
        qacc[...] = jnp.zeros_like(qacc)

    y = jnp.dot(x_ref[...], w_ref[...], preferred_element_type=jnp.float32)
    y_ref[...] = y
    sacc[...] += jnp.sum(y, axis=0, keepdims=True)
    qacc[...] += jnp.sum(y * y, axis=0, keepdims=True)

    @pl.when(i == pl.num_programs(0) - 1)
    def _fin():
        sum_ref[...] = sacc[...]
        ssq_ref[...] = qacc[...]


def _matmul_stats(x2d, w2d):
    m, k = x2d.shape
    cout = w2d.shape[1]
    tm = _pick_tile(m)
    return pl.pallas_call(
        _mm_stats_kernel,
        out_shape=(jax.ShapeDtypeStruct((m, cout), jnp.float32),
                   jax.ShapeDtypeStruct((1, cout), jnp.float32),
                   jax.ShapeDtypeStruct((1, cout), jnp.float32)),
        grid_spec=pltpu.PrefetchScalarGridSpec(
            num_scalar_prefetch=0,
            grid=(m // tm,),
            in_specs=[pl.BlockSpec((tm, k), lambda i: (i, 0)),
                      pl.BlockSpec((k, cout), lambda i: (0, 0))],
            out_specs=(pl.BlockSpec((tm, cout), lambda i: (i, 0)),
                       pl.BlockSpec((1, cout), lambda i: (0, 0)),
                       pl.BlockSpec((1, cout), lambda i: (0, 0))),
            scratch_shapes=[pltpu.VMEM((1, cout), jnp.float32),
                            pltpu.VMEM((1, cout), jnp.float32)]),
        compiler_params=_compiler_params(("arbitrary",)),
    )(x2d, w2d)


# ---------------------------------------------------------------------------
# Kernel 2: fused BN-affine + ReLU + 1x1-conv matmul + output channel stats
# ---------------------------------------------------------------------------
def _bn_relu_mm_stats_kernel(x_ref, s_ref, b_ref, w_ref,
                             y_ref, sum_ref, ssq_ref, sacc, qacc):
    i = pl.program_id(0)

    @pl.when(i == 0)
    def _init():
        sacc[...] = jnp.zeros_like(sacc)
        qacc[...] = jnp.zeros_like(qacc)

    z = jnp.maximum(x_ref[...] * s_ref[...] + b_ref[...], 0.0)
    y = jnp.dot(z, w_ref[...], preferred_element_type=jnp.float32)
    y_ref[...] = y
    sacc[...] += jnp.sum(y, axis=0, keepdims=True)
    qacc[...] += jnp.sum(y * y, axis=0, keepdims=True)

    @pl.when(i == pl.num_programs(0) - 1)
    def _fin():
        sum_ref[...] = sacc[...]
        ssq_ref[...] = qacc[...]


def _bn_relu_matmul_stats(x2d, scale, shift, w2d):
    m, k = x2d.shape
    cout = w2d.shape[1]
    tm = _pick_tile(m)
    return pl.pallas_call(
        _bn_relu_mm_stats_kernel,
        out_shape=(jax.ShapeDtypeStruct((m, cout), jnp.float32),
                   jax.ShapeDtypeStruct((1, cout), jnp.float32),
                   jax.ShapeDtypeStruct((1, cout), jnp.float32)),
        grid_spec=pltpu.PrefetchScalarGridSpec(
            num_scalar_prefetch=0,
            grid=(m // tm,),
            in_specs=[pl.BlockSpec((tm, k), lambda i: (i, 0)),
                      pl.BlockSpec((1, k), lambda i: (0, 0)),
                      pl.BlockSpec((1, k), lambda i: (0, 0)),
                      pl.BlockSpec((k, cout), lambda i: (0, 0))],
            out_specs=(pl.BlockSpec((tm, cout), lambda i: (i, 0)),
                       pl.BlockSpec((1, cout), lambda i: (0, 0)),
                       pl.BlockSpec((1, cout), lambda i: (0, 0))),
            scratch_shapes=[pltpu.VMEM((1, cout), jnp.float32),
                            pltpu.VMEM((1, cout), jnp.float32)]),
        compiler_params=_compiler_params(("arbitrary",)),
    )(x2d, scale, shift, w2d)


# ---------------------------------------------------------------------------
# Kernel 3: fused BN-affine + ReLU + in-kernel 3x3 conv (pad 1) + output stats
#   The image is flat (H*W, Cin); it is written once into a zero-padded VMEM
#   scratch and the conv is 9 shifted flat matmuls; out-of-row leakage of the
#   +-1 column taps is removed with edge-column masks.
# ---------------------------------------------------------------------------
def _make_conv3x3_kernel(g_imgs, hw, w_dim):
    def kernel(x_ref, s_ref, b_ref, w_ref, y_ref, sum_ref, ssq_ref,
               zv, sacc, qacc):
        step = pl.program_id(0)

        @pl.when(step == 0)
        def _init():
            zv[...] = jnp.zeros_like(zv)
            sacc[...] = jnp.zeros_like(sacc)
            qacc[...] = jnp.zeros_like(qacc)

        cout = y_ref.shape[1]
        col = lax.broadcasted_iota(jnp.int32, (hw, 1), 0) % w_dim
        mask_l = (col != 0).astype(jnp.float32)            # j == 0   (dx = 0)
        mask_r = (col != (w_dim - 1)).astype(jnp.float32)  # j == W-1 (dx = 2)

        for g in range(g_imgs):
            z = jnp.maximum(
                x_ref[pl.ds(g * hw, hw), :] * s_ref[...] + b_ref[...], 0.0)
            zv[pl.ds(w_dim + 1, hw), :] = z        # borders stay zero
            acc = jnp.zeros((hw, cout), jnp.float32)
            for dy in range(3):
                for dx in range(3):
                    off = (w_dim + 1) + (dy - 1) * w_dim + (dx - 1)
                    t = zv[pl.ds(off, hw), :]
                    if dx == 0:
                        t = t * mask_l
                    elif dx == 2:
                        t = t * mask_r
                    acc = acc + jnp.dot(t, w_ref[dy, dx],
                                        preferred_element_type=jnp.float32)
            y_ref[pl.ds(g * hw, hw), :] = acc
            sacc[...] += jnp.sum(acc, axis=0, keepdims=True)
            qacc[...] += jnp.sum(acc * acc, axis=0, keepdims=True)

        @pl.when(step == pl.num_programs(0) - 1)
        def _fin():
            sum_ref[...] = sacc[...]
            ssq_ref[...] = qacc[...]

    return kernel


def _bn_relu_conv3x3_stats(x2d, scale, shift, w_hw, n, h, w):
    hw = h * w
    cin = x2d.shape[1]
    cout = w_hw.shape[3]
    g_imgs = n
    for g in range(1, n + 1):
        if n % g == 0 and (g * hw) % 8 == 0:
            g_imgs = g
            break
    kernel = _make_conv3x3_kernel(g_imgs, hw, w)
    return pl.pallas_call(
        kernel,
        out_shape=(jax.ShapeDtypeStruct((n * hw, cout), jnp.float32),
                   jax.ShapeDtypeStruct((1, cout), jnp.float32),
                   jax.ShapeDtypeStruct((1, cout), jnp.float32)),
        grid_spec=pltpu.PrefetchScalarGridSpec(
            num_scalar_prefetch=0,
            grid=(n // g_imgs,),
            in_specs=[pl.BlockSpec((g_imgs * hw, cin), lambda i: (i, 0)),
                      pl.BlockSpec((1, cin), lambda i: (0, 0)),
                      pl.BlockSpec((1, cin), lambda i: (0, 0)),
                      pl.BlockSpec((3, 3, cin, cout),
                                   lambda i: (0, 0, 0, 0))],
            out_specs=(pl.BlockSpec((g_imgs * hw, cout), lambda i: (i, 0)),
                       pl.BlockSpec((1, cout), lambda i: (0, 0)),
                       pl.BlockSpec((1, cout), lambda i: (0, 0))),
            scratch_shapes=[pltpu.VMEM((hw + 2 * w + 2, cin), jnp.float32),
                            pltpu.VMEM((1, cout), jnp.float32),
                            pltpu.VMEM((1, cout), jnp.float32)]),
        compiler_params=_compiler_params(("arbitrary",)),
    )(x2d, scale, shift, w_hw)


# ---------------------------------------------------------------------------
# Kernel 4: fused BN-affine + ReLU + MaxPool 3x3/s2/p1 (stride-2 output only)
#   Input has the W-parity folded into lanes: (N, H, W/2, 2C).
# ---------------------------------------------------------------------------
def _maxpool_kernel(x_ref, s_ref, b_ref, o_ref, sum_ref, ssq_ref,
                    f0, f1, sacc, qacc):
    n = pl.program_id(0)
    h = x_ref.shape[1]
    wo = x_ref.shape[2]
    ho = o_ref.shape[1]
    c = o_ref.shape[3]

    @pl.when(n == 0)
    def _init():
        f0[...] = jnp.zeros_like(f0)
        f1[...] = jnp.zeros_like(f1)
        sacc[...] = jnp.zeros_like(sacc)
        qacc[...] = jnp.zeros_like(qacc)

    z = jnp.maximum(x_ref[0] * s_ref[...] + b_ref[...], 0.0)  # (h, wo, 2c)
    # phase-split padded columns: f0[:, fw] = padded col 2fw, f1[:, fw] = 2fw+1
    f1[pl.ds(1, h), pl.ds(0, wo), :] = z[:, :, 0:c]        # even input cols
    f0[pl.ds(1, h), pl.ds(1, wo), :] = z[:, :, c:2 * c]    # odd  input cols
    # horizontal 3-window max, already at output-column stride 2
    hm = jnp.maximum(f0[pl.ds(0, h + 2), pl.ds(0, wo), :],
                     f1[pl.ds(0, h + 2), pl.ds(0, wo), :])
    hm = jnp.maximum(hm, f0[pl.ds(0, h + 2), pl.ds(1, wo), :])  # (h+2, wo, c)
    # vertical 3-window max at output-row stride 2 (outer-dim reshapes only)
    top = hm[0:2 * ho].reshape(ho, 2, wo, c)
    bot = hm[2:2 * ho + 2].reshape(ho, 2, wo, c)
    out = jnp.maximum(jnp.maximum(top[:, 0], top[:, 1]), bot[:, 0])
    o_ref[0] = out
    sacc[...] += jnp.sum(jnp.sum(out, axis=0), axis=0, keepdims=True)
    qacc[...] += jnp.sum(jnp.sum(out * out, axis=0), axis=0, keepdims=True)

    @pl.when(n == pl.num_programs(0) - 1)
    def _fin():
        sum_ref[...] = sacc[...]
        ssq_ref[...] = qacc[...]


def _bn_relu_maxpool_stats(y_fold, scale, shift):
    n, h, wo, c2 = y_fold.shape
    c = c2 // 2
    ho = h // 2
    s2 = jnp.tile(scale, (1, 2))
    b2 = jnp.tile(shift, (1, 2))
    return pl.pallas_call(
        _maxpool_kernel,
        out_shape=(jax.ShapeDtypeStruct((n, ho, wo, c), jnp.float32),
                   jax.ShapeDtypeStruct((1, c), jnp.float32),
                   jax.ShapeDtypeStruct((1, c), jnp.float32)),
        grid_spec=pltpu.PrefetchScalarGridSpec(
            num_scalar_prefetch=0,
            grid=(n,),
            in_specs=[pl.BlockSpec((1, h, wo, c2), lambda i: (i, 0, 0, 0)),
                      pl.BlockSpec((1, c2), lambda i: (0, 0)),
                      pl.BlockSpec((1, c2), lambda i: (0, 0))],
            out_specs=(pl.BlockSpec((1, ho, wo, c), lambda i: (i, 0, 0, 0)),
                       pl.BlockSpec((1, c), lambda i: (0, 0)),
                       pl.BlockSpec((1, c), lambda i: (0, 0))),
            scratch_shapes=[pltpu.VMEM((h + 2, wo + 1, c), jnp.float32),
                            pltpu.VMEM((h + 2, wo, c), jnp.float32),
                            pltpu.VMEM((1, c), jnp.float32),
                            pltpu.VMEM((1, c), jnp.float32)]),
        compiler_params=_compiler_params(("arbitrary",)),
    )(y_fold, s2, b2)


# ---------------------------------------------------------------------------
# Kernel 5: AvgPool 2x2/s2 (stride-2 output only) + output channel stats
#   Input has the W-parity folded into lanes: (N, H, W/2, 2C).
# ---------------------------------------------------------------------------
def _avgpool_kernel(x_ref, o_ref, sum_ref, ssq_ref, sacc, qacc):
    n = pl.program_id(0)
    h = x_ref.shape[1]
    wo = x_ref.shape[2]
    ho = o_ref.shape[1]
    c = o_ref.shape[3]

    @pl.when(n == 0)
    def _init():
        sacc[...] = jnp.zeros_like(sacc)
        qacc[...] = jnp.zeros_like(qacc)

    x = x_ref[0]                                   # (h, wo, 2c)
    a = x.reshape(ho, 2, wo, 2 * c)                # outer-dim split only
    rs = a[:, 0] + a[:, 1]
    out = (rs[:, :, 0:c] + rs[:, :, c:2 * c]) * 0.25
    o_ref[0] = out
    sacc[...] += jnp.sum(jnp.sum(out, axis=0), axis=0, keepdims=True)
    qacc[...] += jnp.sum(jnp.sum(out * out, axis=0), axis=0, keepdims=True)

    @pl.when(n == pl.num_programs(0) - 1)
    def _fin():
        sum_ref[...] = sacc[...]
        ssq_ref[...] = qacc[...]


def _avgpool_stats(t_fold):
    n, h, wo, c2 = t_fold.shape
    c = c2 // 2
    ho = h // 2
    return pl.pallas_call(
        _avgpool_kernel,
        out_shape=(jax.ShapeDtypeStruct((n, ho, wo, c), jnp.float32),
                   jax.ShapeDtypeStruct((1, c), jnp.float32),
                   jax.ShapeDtypeStruct((1, c), jnp.float32)),
        grid_spec=pltpu.PrefetchScalarGridSpec(
            num_scalar_prefetch=0,
            grid=(n,),
            in_specs=[pl.BlockSpec((1, h, wo, c2), lambda i: (i, 0, 0, 0))],
            out_specs=(pl.BlockSpec((1, ho, wo, c), lambda i: (i, 0, 0, 0)),
                       pl.BlockSpec((1, c), lambda i: (0, 0)),
                       pl.BlockSpec((1, c), lambda i: (0, 0))),
            scratch_shapes=[pltpu.VMEM((1, c), jnp.float32),
                            pltpu.VMEM((1, c), jnp.float32)]),
        compiler_params=_compiler_params(("arbitrary",)),
    )(t_fold)


# ---------------------------------------------------------------------------
# Kernel 6: final BatchNorm affine (norm5, no ReLU)
# ---------------------------------------------------------------------------
def _bn_affine_kernel(x_ref, s_ref, b_ref, o_ref):
    o_ref[...] = x_ref[...] * s_ref[...] + b_ref[...]


def _bn_affine(x2d, scale, shift):
    m, c = x2d.shape
    tm = _pick_tile(m)
    return pl.pallas_call(
        _bn_affine_kernel,
        out_shape=jax.ShapeDtypeStruct((m, c), jnp.float32),
        grid_spec=pltpu.PrefetchScalarGridSpec(
            num_scalar_prefetch=0,
            grid=(m // tm,),
            in_specs=[pl.BlockSpec((tm, c), lambda i: (i, 0)),
                      pl.BlockSpec((1, c), lambda i: (0, 0)),
                      pl.BlockSpec((1, c), lambda i: (0, 0))],
            out_specs=pl.BlockSpec((tm, c), lambda i: (i, 0))),
        compiler_params=_compiler_params(("parallel",)),
    )(x2d, scale, shift)


# ---------------------------------------------------------------------------
# Full forward pass
# ---------------------------------------------------------------------------
def dense_block012_forward(x_nchw, params, cfg, eps=1e-5):
    n = x_nchw.shape[0]
    x = jnp.transpose(x_nchw, (0, 2, 3, 1)).astype(jnp.float32)  # NHWC

    # ---- stem conv0 7x7/s2/p3: im2col in XLA glue (Cin == 1, one-time,
    #      small blow-up), matmul + fused channel stats in Pallas.
    # TODO(synk): fold the stride-2 stem gather into the kernel as well.
    h_in, w_in = x.shape[1], x.shape[2]
    h0, w0 = h_in // 2, w_in // 2
    xp = jnp.pad(x, ((0, 0), (3, 3), (3, 3), (0, 0)))
    cols = [xp[:, dy:dy + 2 * h0:2, dx:dx + 2 * w0:2, :]
            for dy in range(7) for dx in range(7)]
    patches = jnp.stack(cols, axis=3).reshape(n * h0 * w0, 49 * x.shape[3])
    w0c = params['conv0_w']                                  # (C0, 1, 7, 7)
    c0 = w0c.shape[0]
    w0_2d = jnp.transpose(w0c, (2, 3, 1, 0)).reshape(49 * w0c.shape[1], c0)
    y2d, ysum, yssq = _matmul_stats(patches, w0_2d)

    # ---- norm0 + relu0 + pool0 (fused) ----
    sc0, sh0 = _bn_scale_shift(ysum, yssq, n * h0 * w0,
                               params['norm0_g'], params['norm0_b'], eps)
    y_fold = y2d.reshape(n, h0, w0 // 2, 2 * c0)   # fold W-parity into lanes
    pooled, psum, pssq = _bn_relu_maxpool_stats(y_fold, sc0, sh0)

    hc, wc = h0 // 2, w0 // 2
    feats = [pooled]
    stats = [(psum, pssq)]
    cur_c = c0
    growth = cfg['growth_rate']

    for bi, num_layers in enumerate(cfg['block_config']):
        # ----- dense block bi -----
        for li in range(num_layers):
            lp = params['block%d' % bi][li]
            cnt = n * hc * wc
            xcat = jnp.concatenate(feats, axis=-1)
            cin = xcat.shape[-1]
            ssum = jnp.concatenate([t[0] for t in stats], axis=-1)
            sssq = jnp.concatenate([t[1] for t in stats], axis=-1)
            sc1, sh1 = _bn_scale_shift(ssum, sssq, cnt,
                                       lp['norm1_g'], lp['norm1_b'], eps)
            cb = lp['conv1_w'].shape[0]
            w1_2d = jnp.transpose(lp['conv1_w'].reshape(cb, cin), (1, 0))
            btl2d, bsum, bssq = _bn_relu_matmul_stats(
                xcat.reshape(n * hc * wc, cin), sc1, sh1, w1_2d)
            sc2, sh2 = _bn_scale_shift(bsum, bssq, cnt,
                                       lp['norm2_g'], lp['norm2_b'], eps)
            w2_hw = jnp.transpose(lp['conv2_w'], (2, 3, 1, 0))  # (3,3,cb,gr)
            nf2d, nsum, nssq = _bn_relu_conv3x3_stats(
                btl2d, sc2, sh2, w2_hw, n, hc, wc)
            feats.append(nf2d.reshape(n, hc, wc, growth))
            stats.append((nsum, nssq))

        # ----- transition (norm + relu + 1x1 conv + 2x2 avg-pool) -----
        tp = params['trans%d' % (bi + 1)]
        cnt = n * hc * wc
        xcat = jnp.concatenate(feats, axis=-1)
        cin = xcat.shape[-1]
        ssum = jnp.concatenate([t[0] for t in stats], axis=-1)
        sssq = jnp.concatenate([t[1] for t in stats], axis=-1)
        sct, sht = _bn_scale_shift(ssum, sssq, cnt,
                                   tp['norm_g'], tp['norm_b'], eps)
        cout_t = tp['conv_w'].shape[0]
        wt_2d = jnp.transpose(tp['conv_w'].reshape(cout_t, cin), (1, 0))
        t2d, _, _ = _bn_relu_matmul_stats(
            xcat.reshape(n * hc * wc, cin), sct, sht, wt_2d)
        t_fold = t2d.reshape(n, hc, wc // 2, 2 * cout_t)
        pooled, psum, pssq = _avgpool_stats(t_fold)
        hc, wc = hc // 2, wc // 2
        feats = [pooled]
        stats = [(psum, pssq)]
        cur_c = cout_t

    # ---- norm5 (final BatchNorm, no ReLU) ----
    sc5, sh5 = _bn_scale_shift(stats[0][0], stats[0][1], n * hc * wc,
                               params['norm5_g'], params['norm5_b'], eps)
    out2d = _bn_affine(feats[0].reshape(n * hc * wc, cur_c), sc5, sh5)
    out = out2d.reshape(n, hc, wc, cur_c)
    return jnp.transpose(out, (0, 3, 1, 2))        # back to NCHW


# ---------------------------------------------------------------------------
# Parameters + pure-JAX reference for correctness checking
# ---------------------------------------------------------------------------
def make_params(key, cfg):
    keys = iter(jax.random.split(key, 256))

    def conv_w(shape):
        fan_in = shape[1] * shape[2] * shape[3]
        return (jax.random.normal(next(keys), shape, jnp.float32)
                * float(np.sqrt(2.0 / fan_in)))

    def bn_p(c):
        g = 1.0 + 0.1 * jax.random.normal(next(keys), (c,), jnp.float32)
        b = 0.1 * jax.random.normal(next(keys), (c,), jnp.float32)
        return g, b

    p = {}
    c0 = cfg['num_init_features']
    growth = cfg['growth_rate']
    bn_size = cfg['bn_size']
    p['conv0_w'] = conv_w((c0, 1, 7, 7))
    p['norm0_g'], p['norm0_b'] = bn_p(c0)
    nf = c0
    for bi, num_layers in enumerate(cfg['block_config']):
        layers = []
        c = nf
        for _ in range(num_layers):
            lp = {}
            lp['norm1_g'], lp['norm1_b'] = bn_p(c)
            lp['conv1_w'] = conv_w((bn_size * growth, c, 1, 1))
            lp['norm2_g'], lp['norm2_b'] = bn_p(bn_size * growth)
            lp['conv2_w'] = conv_w((growth, bn_size * growth, 3, 3))
            layers.append(lp)
            c += growth
        p['block%d' % bi] = layers
        nf = c
        t_out = (nf // 2 if bi < len(cfg['block_config']) - 1
                 else cfg['num_final_features'])
        tp = {}
        tp['norm_g'], tp['norm_b'] = bn_p(nf)
        tp['conv_w'] = conv_w((t_out, nf, 1, 1))
        p['trans%d' % (bi + 1)] = tp
        nf = t_out
    p['norm5_g'], p['norm5_b'] = bn_p(nf)
    return p


def _reference(x, p, cfg, eps=1e-5):
    def bn(t, g, b):
        m = jnp.mean(t, axis=(0, 2, 3), keepdims=True)
        v = jnp.var(t, axis=(0, 2, 3), keepdims=True)
        return ((t - m) * lax.rsqrt(v + eps) * g[None, :, None, None]
                + b[None, :, None, None])

    def conv(t, w, stride=1, pad=0):
        return lax.conv_general_dilated(
            t, w, (stride, stride), ((pad, pad), (pad, pad)),
            dimension_numbers=("NCHW", "OIHW", "NCHW"),
            precision=lax.Precision.HIGHEST)

    y = conv(x, p['conv0_w'], stride=2, pad=3)
    y = jnp.maximum(bn(y, p['norm0_g'], p['norm0_b']), 0.0)
    y = lax.reduce_window(y, -jnp.inf, lax.max, (1, 1, 3, 3), (1, 1, 2, 2),
                          ((0, 0), (0, 0), (1, 1), (1, 1)))
    feats = [y]
    for bi in range(len(cfg['block_config'])):
        for lp in p['block%d' % bi]:
            c = jnp.concatenate(feats, axis=1)
            btl = conv(jnp.maximum(bn(c, lp['norm1_g'], lp['norm1_b']), 0.0),
                       lp['conv1_w'])
            nf = conv(jnp.maximum(bn(btl, lp['norm2_g'], lp['norm2_b']), 0.0),
                      lp['conv2_w'], pad=1)
            feats.append(nf)
        tp = p['trans%d' % (bi + 1)]
        c = jnp.concatenate(feats, axis=1)
        t = conv(jnp.maximum(bn(c, tp['norm_g'], tp['norm_b']), 0.0),
                 tp['conv_w'])
        t = lax.reduce_window(t, 0.0, lax.add, (1, 1, 2, 2), (1, 1, 2, 2),
                              'VALID') * 0.25
        feats = [t]
    return bn(feats[0], p['norm5_g'], p['norm5_b'])


if __name__ == "__main__":
    cfg = dict(growth_rate=8, block_config=(2, 2, 2), num_init_features=16,
               num_final_features=32, bn_size=4)
    key = jax.random.PRNGKey(0)
    kx, kp = jax.random.split(key)
    x = jax.random.normal(kx, (2, 1, 64, 64), dtype=jnp.float32)
    params = make_params(kp, cfg)

    out = jax.block_until_ready(dense_block012_forward(x, params, cfg))
    ref = jax.block_until_ready(_reference(x, params, cfg))

    assert out.shape == (2, cfg['num_final_features'], 2, 2), out.shape
    np.testing.assert_allclose(np.asarray(out), np.asarray(ref),
                               atol=1e-2, rtol=1e-2)
    print("KERNEL_OK")
</pallas_src>

<mosaic_0001>
module attributes {stable_mosaic.version = 11 : i64} {
  func.func @_mm_stats_kernel(%arg0: i32, %arg1: memref<256x49xf32, #tpu.memory_space<vmem>>, %arg2: memref<49x16xf32, #tpu.memory_space<vmem>>, %arg3: memref<256x16xf32, #tpu.memory_space<vmem>>, %arg4: memref<1x16xf32, #tpu.memory_space<vmem>>, %arg5: memref<1x16xf32, #tpu.memory_space<vmem>>, %arg6: memref<1x16xf32, #tpu.memory_space<vmem>>, %arg7: memref<1x16xf32, #tpu.memory_space<vmem>>) attributes {dimension_semantics = [#tpu.dimension_semantics<arbitrary>], iteration_bounds = array<i64: 8>, scalar_prefetch = 0 : i64, scratch_operands = 2 : i64, tpu.core_type = #tpu.core_type<tc>, window_params = [{transform_indices = @transform_0, window_bounds = array<i64: 256, 49>}, {pipeline_mode = #tpu.pipeline_mode<synchronous>, transform_indices = @transform_1, window_bounds = array<i64: 49, 16>}, {transform_indices = @transform_2, window_bounds = array<i64: 256, 16>}, {pipeline_mode = #tpu.pipeline_mode<synchronous>, transform_indices = @transform_3, window_bounds = array<i64: 1, 16>}, {pipeline_mode = #tpu.pipeline_mode<synchronous>, transform_indices = @transform_4, window_bounds = array<i64: 1, 16>}]} {
    %c0_i32 = arith.constant 0 : i32
    %0 = arith.cmpi eq, %arg0, %c0_i32 : i32
    %1 = arith.extui %0 : i1 to i32
    %c0_i32_0 = arith.constant 0 : i32
    %2 = arith.cmpi ne, %1, %c0_i32_0 : i32
    scf.if %2 {
      %cst_17 = arith.constant 0.000000e+00 : f32
      %21 = vector.broadcast %cst_17 : f32 to vector<1x16xf32>
      %c0_18 = arith.constant 0 : index
      %c0_19 = arith.constant 0 : index
      %22 = vector.load %arg6[%c0_18, %c0_19] : memref<1x16xf32, #tpu.memory_space<vmem>>, vector<1x16xf32>
      tpu.vector_store %arg6[%c0_18, %c0_19], %21 {strides = array<i32>} : memref<1x16xf32, #tpu.memory_space<vmem>>, vector<1x16xf32>,
      %cst_20 = arith.constant 0.000000e+00 : f32
      %23 = vector.broadcast %cst_20 : f32 to vector<1x16xf32>
      %c0_21 = arith.constant 0 : index
      %c0_22 = arith.constant 0 : index
      %24 = vector.load %arg7[%c0_21, %c0_22] : memref<1x16xf32, #tpu.memory_space<vmem>>, vector<1x16xf32>
      tpu.vector_store %arg7[%c0_21, %c0_22], %23 {strides = array<i32>} : memref<1x16xf32, #tpu.memory_space<vmem>>, vector<1x16xf32>,
    } else {
    }
    %c0 = arith.constant 0 : index
    %c0_1 = arith.constant 0 : index
    %3 = vector.load %arg1[%c0, %c0_1] : memref<256x49xf32, #tpu.memory_space<vmem>>, vector<256x49xf32>
    %c0_2 = arith.constant 0 : index
    %c0_3 = arith.constant 0 : index
    %4 = vector.load %arg2[%c0_2, %c0_3] : memref<49x16xf32, #tpu.memory_space<vmem>>, vector<49x16xf32>
    %cst = arith.constant dense<0.000000e+00> : vector<256x16xf32>
    %5 = tpu.matmul %3, %4, %cst {dimension_numbers = #tpu.dot_dimension_numbers<[1], [0], [0], [1], [0, 0, 1, 1], [], []>} : vector<256x49xf32>, vector<49x16xf32>, vector<256x16xf32> -> vector<256x16xf32>
    %c0_4 = arith.constant 0 : index
    %c0_5 = arith.constant 0 : index
    %6 = vector.load %arg3[%c0_4, %c0_5] : memref<256x16xf32, #tpu.memory_space<vmem>>, vector<256x16xf32>
    tpu.vector_store %arg3[%c0_4, %c0_5], %5 {strides = array<i32>} : memref<256x16xf32, #tpu.memory_space<vmem>>, vector<256x16xf32>,
    %c0_6 = arith.constant 0 : index
    %c0_7 = arith.constant 0 : index
    %7 = vector.load %arg6[%c0_6, %c0_7] : memref<1x16xf32, #tpu.memory_space<vmem>>, vector<1x16xf32>
    %cst_8 = arith.constant dense<0.000000e+00> : vector<16xf32>
    %8 = vector.multi_reduction <add>, %5, %cst_8 [0] : vector<256x16xf32> to vector<16xf32>
    %9 = vector.shape_cast %8 : vector<16xf32> to vector<1x16xf32>
    %10 = arith.addf %7, %9 : vector<1x16xf32>
    %c0_9 = arith.constant 0 : index
    %c0_10 = arith.constant 0 : index
    %11 = vector.load %arg6[%c0_9, %c0_10] : memref<1x16xf32, #tpu.memory_space<vmem>>, vector<1x16xf32>
    tpu.vector_store %arg6[%c0_9, %c0_10], %10 {strides = array<i32>} : memref<1x16xf32, #tpu.memory_space<vmem>>, vector<1x16xf32>,
    %c0_11 = arith.constant 0 : index
    %c0_12 = arith.constant 0 : index
    %12 = vector.load %arg7[%c0_11, %c0_12] : memref<1x16xf32, #tpu.memory_space<vmem>>, vector<1x16xf32>
    %13 = arith.mulf %5, %5 : vector<256x16xf32>
    %cst_13 = arith.constant dense<0.000000e+00> : vector<16xf32>
    %14 = vector.multi_reduction <add>, %13, %cst_13 [0] : vector<256x16xf32> to vector<16xf32>
    %15 = vector.shape_cast %14 : vector<16xf32> to vector<1x16xf32>
    %16 = arith.addf %12, %15 : vector<1x16xf32>
    %c0_14 = arith.constant 0 : index
    %c0_15 = arith.constant 0 : index
    %17 = vector.load %arg7[%c0_14, %c0_15] : memref<1x16xf32, #tpu.memory_space<vmem>>, vector<1x16xf32>
    tpu.vector_store %arg7[%c0_14, %c0_15], %16 {strides = array<i32>} : memref<1x16xf32, #tpu.memory_space<vmem>>, vector<1x16xf32>,
    %c7_i32 = arith.constant 7 : i32
    %18 = arith.cmpi eq, %arg0, %c7_i32 : i32
    %19 = arith.extui %18 : i1 to i32
    %c0_i32_16 = arith.constant 0 : i32
    %20 = arith.cmpi ne, %19, %c0_i32_16 : i32
    scf.if %20 {
      %c0_17 = arith.constant 0 : index
      %c0_18 = arith.constant 0 : index
      %21 = vector.load %arg6[%c0_17, %c0_18] : memref<1x16xf32, #tpu.memory_space<vmem>>, vector<1x16xf32>
      %c0_19 = arith.constant 0 : index
      %c0_20 = arith.constant 0 : index
      %22 = vector.load %arg4[%c0_19, %c0_20] : memref<1x16xf32, #tpu.memory_space<vmem>>, vector<1x16xf32>
      tpu.vector_store %arg4[%c0_19, %c0_20], %21 {strides = array<i32>} : memref<1x16xf32, #tpu.memory_space<vmem>>, vector<1x16xf32>,
      %c0_21 = arith.constant 0 : index
      %c0_22 = arith.constant 0 : index
      %23 = vector.load %arg7[%c0_21, %c0_22] : memref<1x16xf32, #tpu.memory_space<vmem>>, vector<1x16xf32>
      %c0_23 = arith.constant 0 : index
      %c0_24 = arith.constant 0 : index
      %24 = vector.load %arg5[%c0_23, %c0_24] : memref<1x16xf32, #tpu.memory_space<vmem>>, vector<1x16xf32>
      tpu.vector_store %arg5[%c0_23, %c0_24], %23 {strides = array<i32>} : memref<1x16xf32, #tpu.memory_space<vmem>>, vector<1x16xf32>,
    } else {
    }
    return
  }
  func.func @transform_0(%arg0: i32) -> (i32, i32) {
    %c0_i32 = arith.constant 0 : i32
    %c0_i32_0 = arith.constant 0 : i32
    return %arg0, %c0_i32 : i32, i32
  }
  func.func @transform_1(%arg0: i32) -> (i32, i32) {
    %c0_i32 = arith.constant 0 : i32
    %c0_i32_0 = arith.constant 0 : i32
    %c0_i32_1 = arith.constant 0 : i32
    return %c0_i32, %c0_i32_0 : i32, i32
  }
  func.func @transform_2(%arg0: i32) -> (i32, i32) {
    %c0_i32 = arith.constant 0 : i32
    %c0_i32_0 = arith.constant 0 : i32
    return %arg0, %c0_i32 : i32, i32
  }
  func.func @transform_3(%arg0: i32) -> (i32, i32) {
    %c0_i32 = arith.constant 0 : i32
    %c0_i32_0 = arith.constant 0 : i32
    %c0_i32_1 = arith.constant 0 : i32
    return %c0_i32, %c0_i32_0 : i32, i32
  }
  func.func @transform_4(%arg0: i32) -> (i32, i32) {
    %c0_i32 = arith.constant 0 : i32
    %c0_i32_0 = arith.constant 0 : i32
    %c0_i32_1 = arith.constant 0 : i32
    return %c0_i32, %c0_i32_0 : i32, i32
  }
}

</mosaic_0001>

<bundles_post_ra>
// kernel: tpu_custom_call.1
= control target key start
LH: loop header
LB: loop body
LE: loop exit
PB: predicated region body
PF: predicated region fallthrough
CT: control target
= control target key end

     0   :  { %10 = vsyncpa [#allocation5], 0  ;;  %s1563_s0 = inlined_call_operand.vmem [shape: f32[2048,49], index: 0, kind: input, shape index: {}]   ;;  %s1564_s1 = inlined_call_operand.vmem [shape: f32[49,16], index: 1, kind: input, shape index: {}]   ;;  %s1565_s2 = inlined_call_operand.vmem [shape: f32[2048,16], index: 2, kind: output, shape index: {0}]   ;;  %s1566_s3 = inlined_call_operand.hbm [shape: f32[1,16], index: 3, kind: output, shape index: {1}]   ;;  %s1567_s4 = inlined_call_operand.hbm [shape: f32[1,16], index: 4, kind: output, shape index: {2}]  }
   0x1   :  { %11 = vsyncpa [#allocation7], 0  ;;  %s1180_s15 = smov 0  }
   0x2 LB: > { %s1186_s16 = sadd.s32 4294967295, %s1150_s15   ;;  %p894_p0 = scmp.ge.s32.totalorder %s1150_s15, 1  ;;  %s1150_s15 = sphi %s1180_s15, %s17_s15  }
   0x3   : > { %p160_p1 = scmp.lt.s32.totalorder %s1150_s15, 9 }
   0x5   : > { %p161_p2 = pnand %p894_p0, %p160_p1 }
   0x6   : > { %s895_s17 = sshll.u32 (!%p161_p2), %s1186_s16, 5  ;;  %p899_p4 = scmp.ne.s32.totalorder (!%p161_p2), %s1186_s16, 0 }
   0x7   : > { %164 = sbr.rel (%p161_p2) target bundleno = 389 (0x185), region = 28  ;;  %p187_p3 = scmp.lt.s32.totalorder (!%p161_p2), %s895_s17, 255 }
   0xe   : > { %s1569_s17 = smov (!%p187_p3, %s895_s17), 255  ;;  %201 = sbr.rel (%p899_p4) target bundleno = 21 (0x15), region = 32 }
   0xf   : > { %s896_s18 = sshll.u32 %s1569_s17, 3  ;;  %vm202_vm0 = vcmask (!%p899_p4), 122880   ;;  %v1152_v0 = vmov (!%p899_p4), 0.0  }
  0x10   : > { %s1194_s21 = scalar_lea.vmem %s1563_s0, %s896_s18  ;;  %s1199_s24 = scalar_lea.vmem %s1565_s2, %s896_s18  ;;  %203 = vst.msk [vmem:[#allocation2] sm:$0x1] (!%p899_p4), %vm202_vm0, %v1152_v0  ;;  %204 = vst.msk [vmem:[#allocation3] sm:$0x1] (!%p899_p4), %vm202_vm0, %v1152_v0 }
  0x15 PF: > { %v237_v1 = vld [vmem:[%s1564_s1] sm:$0xff]  ;;  %v238_v2 = vld [vmem:[%s1564_s1 + $0x8] sm:$0xff]  ;;  %v239_v3 = vld [vmem:[%s1564_s1 + $0x10] sm:$0xff]  ;;  %vm244_vm1 = vcmask 400384   ;;  %vm341_vm2 = vcmask 1040384   ;;  %vm570_vm3 = vcmask 130048  }
  0x16   : > { %v1041_v4 = vpack.c.bf16 %v238_v2, %v237_v1  ;;  %v240_v5 = vld [vmem:[%s1564_s1 + $0x18] sm:$0xff]  ;;  %v241_v7 = vld [vmem:[%s1564_s1 + $0x20] sm:$0xff]  ;;  %v242_v8 = vld [vmem:[%s1564_s1 + $0x28] sm:$0xff]  ;;  %vm674_vm4 = vcmask 122880   ;;  %p933_p5 = scmp.ne.s32.totalorder %s1186_s16, 7 }
  0x17   : > { %v1045_v6 = vpack.c.bf16 %v240_v5, %v239_v3  ;;  %v205_v9 = vld [vmem:[%s1194_s21] sm:$0xff]  ;;  %v1049_v10 = vpack.c.bf16 %v242_v8, %v241_v7  ;;  %v243_v12 = vld [vmem:[%s1564_s1 + $0x30] sm:$0x1]  ;;  %v206_v13 = vld [vmem:[%s1194_s21 + $0x8] sm:$0xff] }
  0x18   : > { %1042 = vmatprep.subr.bf16.mxu0 %v1041_v4  ;;  %993 = vmatprep.mubr.msk.f32.mxu0 %vm244_vm1, %v205_v9  ;;  %v221_v11 = vld [vmem:[%s1194_s21 + $0x80] sm:$0xff]  ;;  %v207_v14 = vld [vmem:[%s1194_s21 + $0x10] sm:$0xff]  ;;  %v222_v15 = vld [vmem:[%s1194_s21 + $0x88] sm:$0xff] }
  0x19   : > { %1044 = vmatpush3.bf16.msra.mxu0 %v1041_v4  ;;  %1053 = vmatprep.subr.bf16.mxu1 %v1041_v4  ;;  %v223_v16 = vld [vmem:[%s1194_s21 + $0x90] sm:$0xff]  ;;  %v208_v17 = vld [vmem:[%s1194_s21 + $0x18] sm:$0xff]  ;;  %v209_v18 = vld [vmem:[%s1194_s21 + $0x20] sm:$0xff] }
  0x1a   : > { %1046 = vmatprep.subr.bf16.mxu0 %v1045_v6  ;;  %1057 = vmatpush3.bf16.msra.mxu1 %v1041_v4  ;;  %v224_v19 = vld [vmem:[%s1194_s21 + $0x98] sm:$0xff]  ;;  %v225_v20 = vld [vmem:[%s1194_s21 + $0xa0] sm:$0xff]  ;;  %v210_v21 = vld [vmem:[%s1194_s21 + $0x28] sm:$0xff] }
  0x1b   : > { %1054 = vmatprep.subr.bf16.mxu1 %v1045_v6  ;;  %1017 = vmatprep.mubr.msk.f32.mxu1 %vm244_vm1, %v221_v11  ;;  %v211_v22 = vld [vmem:[%s1194_s21 + $0x30] sm:$0xff]  ;;  %v226_v23 = vld [vmem:[%s1194_s21 + $0xa8] sm:$0xff]  ;;  %v212_v25 = vld [vmem:[%s1194_s21 + $0x38] sm:$0xff] }
  0x1c   : > { %v227_v24 = vld [vmem:[%s1194_s21 + $0xb0] sm:$0xff]  ;;  %v213_v26 = vld [vmem:[%s1194_s21 + $0x40] sm:$0xff]  ;;  %v228_v27 = vld [vmem:[%s1194_s21 + $0xb8] sm:$0xff] }
  0x1d   : > { %1048 = vmatpush3.bf16.msra.mxu0 %v1045_v6  ;;  %v229_v28 = vld [vmem:[%s1194_s21 + $0xc0] sm:$0xff]  ;;  %v214_v29 = vld [vmem:[%s1194_s21 + $0x48] sm:$0xff]  ;;  %v215_v30 = vld [vmem:[%s1194_s21 + $0x50] sm:$0xff] }
  0x1e   : > { %1050 = vmatprep.subr.bf16.mxu0 %v1049_v10  ;;  %1058 = vmatpush3.bf16.msra.mxu1 %v1045_v6  ;;  %v230_v31 = vld [vmem:[%s1194_s21 + $0xc8] sm:$0xff]  ;;  %v231_v32 = vld [vmem:[%s1194_s21 + $0xd0] sm:$0xff]  ;;  %v216_v33 = vld [vmem:[%s1194_s21 + $0x58] sm:$0xff] }
  0x1f   : > { %1055 = vmatprep.subr.bf16.mxu1 %v1049_v10  ;;  %v217_v34 = vld [vmem:[%s1194_s21 + $0x60] sm:$0xff]  ;;  %v232_v35 = vld [vmem:[%s1194_s21 + $0xd8] sm:$0xff]  ;;  %v218_v37 = vld [vmem:[%s1194_s21 + $0x68] sm:$0xff] }
  0x20   : > { %v233_v36 = vld [vmem:[%s1194_s21 + $0xe0] sm:$0xff]  ;;  %v219_v38 = vld [vmem:[%s1194_s21 + $0x70] sm:$0xff]  ;;  %v234_v39 = vld [vmem:[%s1194_s21 + $0xe8] sm:$0xff] }
  0x21   : > { %1052 = vmatpush3.bf16.msra.mxu0 %v1049_v10  ;;  %v235_v40 = vld [vmem:[%s1194_s21 + $0xf0] sm:$0xff]  ;;  %v220_v41 = vld [vmem:[%s1194_s21 + $0x78] sm:$0xff] }
  0x22   : > { %991 = vmatprep.subr.msk.mxu0 %vm341_vm2, %v243_v12  ;;  %1059 = vmatpush3.bf16.msra.mxu1 %v1049_v10  ;;  %v236_v42 = vld [vmem:[%s1194_s21 + $0xf8] sm:$0xff] }
  0x23   : > { %1056 = vmatprep.subr.msk.mxu1 %vm341_vm2, %v243_v12 }
  0x25   : > { %992 = vmatpush3.msk.msra.mxu0 %vm341_vm2, %v243_v12 }
  0x26   : > { %994 = vmatmul.mubr.msk.f32.vlgmr.msra.gmra.mrb[0].mxu0 %vm244_vm1, %v206_v13  ;;  %1060 = vmatpush3.msk.msra.mxu1 %vm341_vm2, %v243_v12 }
  0x27   : > { %996 = vmatprep.mubr.msk.f32.mxu0 %vm244_vm1, %v207_v14  ;;  %1018 = vmatmul.mubr.msk.f32.vlgmr.msra.gmra.mrb[0].mxu1 %vm244_vm1, %v222_v15 }
  0x28   : > { %1020 = vmatprep.mubr.msk.f32.mxu1 %vm244_vm1, %v223_v16 }
  0x2a   : > { %997 = vmatmul.mubr.msk.f32.gmra.mrb[2].mxu0 %vm244_vm1, %v208_v17 }
  0x2b   : > { %999 = vmatprep.mubr.msk.f32.mxu0 %vm244_vm1, %v209_v18  ;;  %1021 = vmatmul.mubr.msk.f32.gmra.mrb[2].mxu1 %vm244_vm1, %v224_v19 }
  0x2c   : > { %1023 = vmatprep.mubr.msk.f32.mxu1 %vm244_vm1, %v225_v20 }
  0x2e   : > { %1000 = vmatmul.mubr.msk.f32.gmra.mrb[4].mxu0 %vm244_vm1, %v210_v21 }
  0x2f   : > { %1002 = vmatprep.mubr.msk.f32.mxu0 %vm244_vm1, %v211_v22  ;;  %1024 = vmatmul.mubr.msk.f32.gmra.mrb[4].mxu1 %vm244_vm1, %v226_v23 }
  0x30   : > { %1026 = vmatprep.mubr.msk.f32.mxu1 %vm244_vm1, %v227_v24 }
  0x32   : > { %1003 = vmatmul.mubr.msk.f32.gmra.mrb[6].mxu0 %vm244_vm1, %v212_v25 }
  0x33   : > { %1005 = vmatprep.mubr.msk.f32.mxu0 %vm244_vm1, %v213_v26  ;;  %1027 = vmatmul.mubr.msk.f32.gmra.mrb[6].mxu1 %vm244_vm1, %v228_v27 }
  0x34   : > { %1029 = vmatprep.mubr.msk.f32.mxu1 %vm244_vm1, %v229_v28 }
  0x36   : > { %1006 = vmatmul.mubr.msk.f32.gmra.mrb[8].mxu0 %vm244_vm1, %v214_v29 }
  0x37   : > { %1008 = vmatprep.mubr.msk.f32.mxu0 %vm244_vm1, %v215_v30  ;;  %1030 = vmatmul.mubr.msk.f32.gmra.mrb[8].mxu1 %vm244_vm1, %v230_v31 }
  0x38   : > { %1032 = vmatprep.mubr.msk.f32.mxu1 %vm244_vm1, %v231_v32 }
  0x3a   : > { %1009 = vmatmul.mubr.msk.f32.gmra.mrb[10].mxu0 %vm244_vm1, %v216_v33 }
  0x3b   : > { %1011 = vmatprep.mubr.msk.f32.mxu0 %vm244_vm1, %v217_v34  ;;  %1033 = vmatmul.mubr.msk.f32.gmra.mrb[10].mxu1 %vm244_vm1, %v232_v35 }
  0x3c   : > { %1035 = vmatprep.mubr.msk.f32.mxu1 %vm244_vm1, %v233_v36 }
  0x3e   : > { %1012 = vmatmul.mubr.msk.f32.gmra.mrb[12].mxu0 %vm244_vm1, %v218_v37 }
  0x3f   : > { %1014 = vmatprep.mubr.msk.f32.mxu0 %vm244_vm1, %v219_v38  ;;  %1036 = vmatmul.mubr.msk.f32.gmra.mrb[12].mxu1 %vm244_vm1, %v234_v39 }
  0x40   : > { %1038 = vmatprep.mubr.msk.f32.mxu1 %vm244_vm1, %v235_v40 }
  0x42   : > { %1015 = vmatmul.mubr.msk.f32.gmra.mrb[14].mxu0 %vm244_vm1, %v220_v41 }
  0x43   : > { %1039 = vmatmul.mubr.msk.f32.gmra.mrb[14].mxu1 %vm244_vm1, %v236_v42 }
  0xf9   : > { %v995_v43 = vpop.f32.mrb[0].mxu0 }
  0xfa   : > { %572 = vst.msk [vmem:[%s1199_s24 + $0x8] sm:$0xff] %vm570_vm3, %v995_v43  ;;  %v605_v44 = vsel %vm570_vm3, %v995_v43, 0.0  ;;  %v678_v45 = vmul.f32 %v995_v43, %v995_v43  ;;  %v411_v46 = vpop.f32.mrb[1].mxu0  ;;  %v1290_v47 = vpop.f32.mrb[0].mxu1 }
  0xfb   : > { %571 = vst.msk [vmem:[%s1199_s24] sm:$0xff] %vm570_vm3, %v411_v46  ;;  %v604_v48 = vsel %vm570_vm3, %v411_v46, 0.0  ;;  %v677_v49 = vmul.f32 %v411_v46, %v411_v46  ;;  %588 = vst.msk [vmem:[%s1199_s24 + $0x88] sm:$0xff] %vm570_vm3, %v1290_v47  ;;  %v1298_v50 = vpop.f32.mrb[1].mxu1 }
  0xfc   : > { %v710_v51 = vsel %vm570_vm3, %v678_v45, 0.0  ;;  %v606_v52 = vadd.f32 %v605_v44, %v604_v48  ;;  %587 = vst.msk [vmem:[%s1199_s24 + $0x80] sm:$0xff] %vm570_vm3, %v1298_v50 }
  0xfd   : > { %v709_v53 = vsel %vm570_vm3, %v677_v49, 0.0  ;;  %v998_v54 = vpop.f32.mrb[2].mxu0 }
  0xfe   : > { %v711_v55 = vadd.f32 %v710_v51, %v709_v53  ;;  %574 = vst.msk [vmem:[%s1199_s24 + $0x18] sm:$0xff] %vm570_vm3, %v998_v54  ;;  %v421_v56 = vpop.f32.mrb[3].mxu0  ;;  %v1307_v57 = vpop.f32.mrb[2].mxu1  ;;  %v680_v58 = vmul.f32 %v998_v54, %v998_v54  ;;  %v609_v63 = vsel %vm570_vm3, %v998_v54, 0.0 }
  0xff   : > { %573 = vst.msk [vmem:[%s1199_s24 + $0x10] sm:$0xff] %vm570_vm3, %v421_v56  ;;  %v607_v59 = vsel %vm570_vm3, %v421_v56, 0.0  ;;  %v679_v60 = vmul.f32 %v421_v56, %v421_v56  ;;  %590 = vst.msk [vmem:[%s1199_s24 + $0x98] sm:$0xff] %vm570_vm3, %v1307_v57  ;;  %v1315_v61 = vpop.f32.mrb[3].mxu1 }
 0x100   : > { %v608_v62 = vadd.f32 %v607_v59, %v606_v52  ;;  %589 = vst.msk [vmem:[%s1199_s24 + $0x90] sm:$0xff] %vm570_vm3, %v1315_v61  ;;  %v714_v6 = vsel %vm570_vm3, %v680_v58, 0.0 }
 0x101   : > { %v712_v0 = vsel %vm570_vm3, %v679_v60, 0.0  ;;  %v1001_v1 = vpop.f32.mrb[4].mxu0 }
 0x102   : > { %v713_v2 = vadd.f32 %v712_v0, %v711_v55  ;;  %576 = vst.msk [vmem:[%s1199_s24 + $0x28] sm:$0xff] %vm570_vm3, %v1001_v1  ;;  %v431_v3 = vpop.f32.mrb[5].mxu0  ;;  %v610_v4 = vadd.f32 %v609_v63, %v608_v62  ;;  %v1324_v5 = vpop.f32.mrb[4].mxu1  ;;  %v682_v7 = vmul.f32 %v1001_v1, %v1001_v1  ;;  %v613_v13 = vsel %vm570_vm3, %v1001_v1, 0.0 }
 0x103   : > { %575 = vst.msk [vmem:[%s1199_s24 + $0x20] sm:$0xff] %vm570_vm3, %v431_v3  ;;  %v611_v8 = vsel %vm570_vm3, %v431_v3, 0.0  ;;  %v681_v9 = vmul.f32 %v431_v3, %v431_v3  ;;  %592 = vst.msk [vmem:[%s1199_s24 + $0xa8] sm:$0xff] %vm570_vm3, %v1324_v5  ;;  %v1333_v10 = vpop.f32.mrb[5].mxu1 }
 0x104   : > { %v612_v11 = vadd.f32 %v611_v8, %v610_v4  ;;  %v715_v12 = vadd.f32 %v714_v6, %v713_v2  ;;  %591 = vst.msk [vmem:[%s1199_s24 + $0xa0] sm:$0xff] %vm570_vm3, %v1333_v10  ;;  %v718_v20 = vsel %vm570_vm3, %v682_v7, 0.0 }
 0x105   : > { %v716_v14 = vsel %vm570_vm3, %v681_v9, 0.0  ;;  %v1004_v15 = vpop.f32.mrb[6].mxu0 }
 0x106   : > { %v717_v16 = vadd.f32 %v716_v14, %v715_v12  ;;  %578 = vst.msk [vmem:[%s1199_s24 + $0x38] sm:$0xff] %vm570_vm3, %v1004_v15  ;;  %v441_v17 = vpop.f32.mrb[7].mxu0  ;;  %v614_v18 = vadd.f32 %v613_v13, %v612_v11  ;;  %v1342_v19 = vpop.f32.mrb[6].mxu1  ;;  %v684_v21 = vmul.f32 %v1004_v15, %v1004_v15  ;;  %v617_v27 = vsel %vm570_vm3, %v1004_v15, 0.0 }
 0x107   : > { %577 = vst.msk [vmem:[%s1199_s24 + $0x30] sm:$0xff] %vm570_vm3, %v441_v17  ;;  %v615_v22 = vsel %vm570_vm3, %v441_v17, 0.0  ;;  %v683_v23 = vmul.f32 %v441_v17, %v441_v17  ;;  %594 = vst.msk [vmem:[%s1199_s24 + $0xb8] sm:$0xff] %vm570_vm3, %v1342_v19  ;;  %v1351_v24 = vpop.f32.mrb[7].mxu1  ;;  %v693_v17 = vmul.f32 %v1298_v50, %v1298_v50 }
 0x108   : > { %v616_v25 = vadd.f32 %v615_v22, %v614_v18  ;;  %v719_v26 = vadd.f32 %v718_v20, %v717_v16  ;;  %593 = vst.msk [vmem:[%s1199_s24 + $0xb0] sm:$0xff] %vm570_vm3, %v1351_v24  ;;  %v722_v34 = vsel %vm570_vm3, %v684_v21, 0.0 }
 0x109   : > { %v720_v28 = vsel %vm570_vm3, %v683_v23, 0.0  ;;  %v1007_v29 = vpop.f32.mrb[8].mxu0 }
 0x10a   : > { %v721_v30 = vadd.f32 %v720_v28, %v719_v26  ;;  %580 = vst.msk [vmem:[%s1199_s24 + $0x48] sm:$0xff] %vm570_vm3, %v1007_v29  ;;  %v451_v31 = vpop.f32.mrb[9].mxu0  ;;  %v618_v32 = vadd.f32 %v617_v27, %v616_v25  ;;  %v1360_v33 = vpop.f32.mrb[8].mxu1  ;;  %v686_v35 = vmul.f32 %v1007_v29, %v1007_v29  ;;  %v621_v41 = vsel %vm570_vm3, %v1007_v29, 0.0 }
 0x10b   : > { %579 = vst.msk [vmem:[%s1199_s24 + $0x40] sm:$0xff] %vm570_vm3, %v451_v31  ;;  %v619_v36 = vsel %vm570_vm3, %v451_v31, 0.0  ;;  %v685_v37 = vmul.f32 %v451_v31, %v451_v31  ;;  %596 = vst.msk [vmem:[%s1199_s24 + $0xc8] sm:$0xff] %vm570_vm3, %v1360_v33  ;;  %v1369_v38 = vpop.f32.mrb[9].mxu1 }
 0x10c   : > { %v620_v39 = vadd.f32 %v619_v36, %v618_v32  ;;  %v723_v40 = vadd.f32 %v722_v34, %v721_v30  ;;  %595 = vst.msk [vmem:[%s1199_s24 + $0xc0] sm:$0xff] %vm570_vm3, %v1369_v38  ;;  %v726_v49 = vsel %vm570_vm3, %v686_v35, 0.0  ;;  %v635_v30 = vsel %vm570_vm3, %v1298_v50, 0.0 }
 0x10d   : > { %v724_v42 = vsel %vm570_vm3, %v685_v37, 0.0  ;;  %v1010_v43 = vpop.f32.mrb[10].mxu0  ;;  %v694_v35 = vmul.f32 %v1290_v47, %v1290_v47  ;;  %v740_v37 = vsel %vm570_vm3, %v693_v17, 0.0  ;;  %v702_v17 = vmul.f32 %v1360_v33, %v1360_v33 }
 0x10e   : > { %v725_v44 = vadd.f32 %v724_v42, %v723_v40  ;;  %582 = vst.msk [vmem:[%s1199_s24 + $0x58] sm:$0xff] %vm570_vm3, %v1010_v43  ;;  %v461_v45 = vpop.f32.mrb[11].mxu0  ;;  %v622_v46 = vadd.f32 %v621_v41, %v620_v39  ;;  %v1378_v48 = vpop.f32.mrb[10].mxu1  ;;  %v688_v51 = vmul.f32 %v1010_v43, %v1010_v43  ;;  %v625_v58 = vsel %vm570_vm3, %v1010_v43, 0.0 }
 0x10f   : > { %581 = vst.msk [vmem:[%s1199_s24 + $0x50] sm:$0xff] %vm570_vm3, %v461_v45  ;;  %v623_v52 = vsel %vm570_vm3, %v461_v45, 0.0  ;;  %v687_v53 = vmul.f32 %v461_v45, %v461_v45  ;;  %598 = vst.msk [vmem:[%s1199_s24 + $0xd8] sm:$0xff] %vm570_vm3, %v1378_v48  ;;  %v1387_v54 = vpop.f32.mrb[11].mxu1  ;;  %v695_v39 = vmul.f32 %v1315_v61, %v1315_v61  ;;  %v637_v42 = vsel %vm570_vm3, %v1290_v47, 0.0 }
 0x110   : > { %v624_v55 = vadd.f32 %v623_v52, %v622_v46  ;;  %v727_v56 = vadd.f32 %v726_v49, %v725_v44  ;;  %597 = vst.msk [vmem:[%s1199_s24 + $0xd0] sm:$0xff] %vm570_vm3, %v1387_v54  ;;  %v730_v2 = vsel %vm570_vm3, %v688_v51, 0.0  ;;  %v639_v43 = vsel %vm570_vm3, %v1315_v61, 0.0 }
 0x111   : > { %v728_v59 = vsel %vm570_vm3, %v687_v53, 0.0  ;;  %v1013_v60 = vpop.f32.mrb[12].mxu0  ;;  %v742_v46 = vsel %vm570_vm3, %v694_v35, 0.0  ;;  %v696_v49 = vmul.f32 %v1307_v57, %v1307_v57  ;;  %v744_v51 = vsel %vm570_vm3, %v695_v39, 0.0 }
 0x112   : > { %v729_v62 = vadd.f32 %v728_v59, %v727_v56  ;;  %584 = vst.msk [vmem:[%s1199_s24 + $0x68] sm:$0xff] %vm570_vm3, %v1013_v60  ;;  %v471_v63 = vpop.f32.mrb[13].mxu0  ;;  %v626_v0 = vadd.f32 %v625_v58, %v624_v55  ;;  %v1396_v1 = vpop.f32.mrb[12].mxu1  ;;  %v690_v3 = vmul.f32 %v1013_v60, %v1013_v60  ;;  %v629_v11 = vsel %vm570_vm3, %v1013_v60, 0.0 }
 0x113   : > { %583 = vst.msk [vmem:[%s1199_s24 + $0x60] sm:$0xff] %vm570_vm3, %v471_v63  ;;  %v627_v4 = vsel %vm570_vm3, %v471_v63, 0.0  ;;  %v689_v6 = vmul.f32 %v471_v63, %v471_v63  ;;  %600 = vst.msk [vmem:[%s1199_s24 + $0xe8] sm:$0xff] %vm570_vm3, %v1396_v1  ;;  %v1405_v7 = vpop.f32.mrb[13].mxu1  ;;  %v697_v52 = vmul.f32 %v1333_v10, %v1333_v10  ;;  %v641_v47 = vsel %vm570_vm3, %v1307_v57, 0.0 }
 0x114   : > { %v628_v8 = vadd.f32 %v627_v4, %v626_v0  ;;  %v731_v9 = vadd.f32 %v730_v2, %v729_v62  ;;  %599 = vst.msk [vmem:[%s1199_s24 + $0xe0] sm:$0xff] %vm570_vm3, %v1405_v7  ;;  %v734_v20 = vsel %vm570_vm3, %v690_v3, 0.0  ;;  %v643_v61 = vsel %vm570_vm3, %v1333_v10, 0.0 }
 0x115   : > { %v732_v12 = vsel %vm570_vm3, %v689_v6, 0.0  ;;  %v1016_v13 = vpop.f32.mrb[14].mxu0  ;;  %v746_v59 = vsel %vm570_vm3, %v696_v49, 0.0  ;;  %v698_v60 = vmul.f32 %v1324_v5, %v1324_v5  ;;  %v748_v62 = vsel %vm570_vm3, %v697_v52, 0.0 }
 0x116   : > { %v733_v14 = vadd.f32 %v732_v12, %v731_v9  ;;  %586 = vst.msk [vmem:[%s1199_s24 + $0x78] sm:$0xff] %vm570_vm3, %v1016_v13  ;;  %v481_v15 = vpop.f32.mrb[15].mxu0  ;;  %v630_v16 = vadd.f32 %v629_v11, %v628_v8  ;;  %v1416_v18 = vpop.f32.mrb[14].mxu1  ;;  %v692_v21 = vmul.f32 %v1016_v13, %v1016_v13  ;;  %v633_v28 = vsel %vm570_vm3, %v1016_v13, 0.0 }
 0x117   : > { %585 = vst.msk [vmem:[%s1199_s24 + $0x70] sm:$0xff] %vm570_vm3, %v481_v15  ;;  %v631_v22 = vsel %vm570_vm3, %v481_v15, 0.0  ;;  %v691_v23 = vmul.f32 %v481_v15, %v481_v15  ;;  %602 = vst.msk [vmem:[%s1199_s24 + $0xf8] sm:$0xff] %vm570_vm3, %v1416_v18  ;;  %v1425_v25 = vpop.f32.mrb[15].mxu1  ;;  %v708_v31 = vmul.f32 %v1416_v18, %v1416_v18  ;;  %v699_v63 = vmul.f32 %v1351_v24, %v1351_v24 }
 0x118   : > { %v632_v26 = vadd.f32 %v631_v22, %v630_v16  ;;  %v735_v27 = vadd.f32 %v734_v20, %v733_v14  ;;  %601 = vst.msk [vmem:[%s1199_s24 + $0xf0] sm:$0xff] %vm570_vm3, %v1425_v25  ;;  %v738_v36 = vsel %vm570_vm3, %v692_v21, 0.0  ;;  %v645_v57 = vsel %vm570_vm3, %v1324_v5, 0.0 }
 0x119   : > { %v736_v29 = vsel %vm570_vm3, %v691_v23, 0.0  ;;  %v1443_v40 = vsel %vm570_vm3, %v708_v31, 0.0  ;;  %v647_v10 = vsel %vm570_vm3, %v1351_v24, 0.0  ;;  %v750_v6 = vsel %vm570_vm3, %v698_v60, 0.0 }
 0x11a   : > { %v634_v32 = vadd.f32 %v633_v28, %v632_v26  ;;  %v737_v34 = vadd.f32 %v736_v29, %v735_v27  ;;  %v700_v8 = vmul.f32 %v1342_v19, %v1342_v19  ;;  %v752_v9 = vsel %vm570_vm3, %v699_v63, 0.0 }
 0x11b   : > { %v701_v11 = vmul.f32 %v1369_v38, %v1369_v38  ;;  %v649_v5 = vsel %vm570_vm3, %v1342_v19, 0.0  ;;  %v651_v24 = vsel %vm570_vm3, %v1369_v38, 0.0  ;;  %v703_v21 = vmul.f32 %v1387_v54, %v1387_v54 }
 0x11c   : > { %v739_v41 = vadd.f32 %v738_v36, %v737_v34  ;;  %v636_v50 = vadd.f32 %v635_v30, %v634_v32  ;;  %v754_v16 = vsel %vm570_vm3, %v700_v8, 0.0  ;;  %v653_v19 = vsel %vm570_vm3, %v1360_v33, 0.0 }
 0x11d   : > { %v756_v20 = vsel %vm570_vm3, %v701_v11, 0.0  ;;  %v655_v38 = vsel %vm570_vm3, %v1387_v54, 0.0  ;;  %v758_v28 = vsel %vm570_vm3, %v702_v17, 0.0  ;;  %v704_v29 = vmul.f32 %v1378_v48, %v1378_v48 }
 0x11e   : > { %v741_v44 = vadd.f32 %v740_v37, %v739_v41  ;;  %v638_v45 = vadd.f32 %v637_v42, %v636_v50  ;;  %v760_v30 = vsel %vm570_vm3, %v703_v21, 0.0  ;;  %v705_v31 = vmul.f32 %v1405_v7, %v1405_v7 }
 0x11f   : > { %v657_v33 = vsel %vm570_vm3, %v1378_v48, 0.0  ;;  %v659_v54 = vsel %vm570_vm3, %v1405_v7, 0.0  ;;  %v762_v37 = vsel %vm570_vm3, %v704_v29, 0.0  ;;  %v706_v39 = vmul.f32 %v1396_v1, %v1396_v1 }
 0x120   : > { %v640_v53 = vadd.f32 %v639_v43, %v638_v45  ;;  %v743_v55 = vadd.f32 %v742_v46, %v741_v44  ;;  %v764_v41 = vsel %vm570_vm3, %v705_v31, 0.0  ;;  %v707_v50 = vmul.f32 %v1425_v25, %v1425_v25 }
 0x121   : > { %v661_v48 = vsel %vm570_vm3, %v1396_v1, 0.0  ;;  %v663_v7 = vsel %vm570_vm3, %v1425_v25, 0.0  ;;  %v766_v46 = vsel %vm570_vm3, %v706_v39, 0.0 }
 0x122   : > { %v745_v56 = vadd.f32 %v744_v51, %v743_v55  ;;  %v642_v58 = vadd.f32 %v641_v47, %v640_v53  ;;  %v768_v49 = vsel %vm570_vm3, %v707_v50, 0.0  ;;  %v665_v53 = vsel %vm570_vm3, %v1416_v18, 0.0 }
 0x124   : > { %v644_v0 = vadd.f32 %v643_v61, %v642_v58  ;;  %v747_v2 = vadd.f32 %v746_v59, %v745_v56 }
 0x126   : > { %v749_v3 = vadd.f32 %v748_v62, %v747_v2  ;;  %v646_v4 = vadd.f32 %v645_v57, %v644_v0  ;;  %v603_v2 = vld [vmem:[#allocation2] sm:$0x1] }
 0x128   : > { %v648_v12 = vadd.f32 %v647_v10, %v646_v4  ;;  %v751_v13 = vadd.f32 %v750_v6, %v749_v3  ;;  %v676_v3 = vld [vmem:[#allocation3] sm:$0x1] }
 0x12a   : > { %v753_v14 = vadd.f32 %v752_v9, %v751_v13  ;;  %v650_v15 = vadd.f32 %v649_v5, %v648_v12 }
 0x12c   : > { %v652_v22 = vadd.f32 %v651_v24, %v650_v15  ;;  %v755_v23 = vadd.f32 %v754_v16, %v753_v14 }
 0x12e   : > { %v757_v26 = vadd.f32 %v756_v20, %v755_v23  ;;  %v654_v27 = vadd.f32 %v653_v19, %v652_v22 }
 0x130   : > { %v656_v32 = vadd.f32 %v655_v38, %v654_v27  ;;  %v759_v34 = vadd.f32 %v758_v28, %v757_v26 }
 0x132   : > { %v761_v35 = vadd.f32 %v760_v30, %v759_v34  ;;  %v658_v36 = vadd.f32 %v657_v33, %v656_v32 }
 0x134   : > { %v660_v42 = vadd.f32 %v659_v54, %v658_v36  ;;  %v763_v43 = vadd.f32 %v762_v37, %v761_v35 }
 0x136   : > { %v765_v44 = vadd.f32 %v764_v41, %v763_v43  ;;  %v662_v45 = vadd.f32 %v661_v48, %v660_v42 }
 0x138   : > { %v664_v51 = vadd.f32 %v663_v7, %v662_v45  ;;  %v767_v52 = vadd.f32 %v766_v46, %v765_v44 }
 0x13a   : > { %v666_v55 = vadd.f32 %v665_v53, %v664_v51  ;;  %v769_v47 = vadd.f32 %v768_v49, %v767_v52 }
 0x13c   : > { %v667_v61 = vrot.slane %v666_v55, 4  ;;  %v771_v56 = vadd.f32 %v1443_v40, %v769_v47 }
 0x13e   : > { %v668_v1 = vadd.f32 %v667_v61, %v666_v55  ;;  %v772_v58 = vrot.slane %v771_v56, 4 }
 0x140   : > { %v669_v59 = vrot.slane %v668_v1, 2  ;;  %v773_v25 = vadd.f32 %v772_v58, %v771_v56 }
 0x142   : > { %v670_v60 = vadd.f32 %v669_v59, %v668_v1  ;;  %v774_v62 = vrot.slane %v773_v25, 2 }
 0x144   : > { %v671_v63 = vrot.slane %v670_v60, 1  ;;  %v775_v0 = vadd.f32 %v774_v62, %v773_v25 }
 0x146   : > { %v672_v57 = vadd.f32 %v671_v63, %v670_v60  ;;  %v776_v10 = vrot.slane %v775_v0, 1  ;;  %783 = sbr.rel (%p933_p5) target bundleno = 341 (0x155), region = 36 }
 0x148   : > { %v673_v4 = vadd.f32 %v672_v57, %v603_v2  ;;  %v777_v18 = vadd.f32 %v776_v10, %v775_v0 }
 0x14a   : > { %675 = vst.msk [vmem:[#allocation2] sm:$0x1] %vm674_vm4, %v673_v4  ;;  %v778_v6 = vadd.f32 %v777_v18, %v676_v3 }
 0x14c   : > { %779 = vst.msk [vmem:[#allocation3] sm:$0x1] %vm674_vm4, %v778_v6 }
 0x151   : > { %v784_v40 = vld [vmem:[#allocation2] sm:$0x1] }
 0x152   : > { %785 = vst.msk [vmem:[#allocation4] sm:$0x1] %vm674_vm4, %v784_v40 }
 0x153   : > { %v786_v8 = vld [vmem:[#allocation3] sm:$0x1] }
 0x154   : > { %787 = vst.msk [vmem:[#allocation6] sm:$0x1] %vm674_vm4, %v786_v8 }
 0x155 PF: > { %p1069_p6 = scmp.eq.s32.totalorder %s1186_s16, 7  ;;  %s1153_s13 = smov [#allocation4]  }
 0x156   : > { %s804_s14 = sshll.u32 %s1153_s13, 4  ;;  %s1154_s17 = smov [#allocation6]   ;;  %s805_s14 = int_to_ptr.vmem [resolvable:$true] %s804_s14 }
 0x157   : > { %s815_s18 = sshll.u32 %s1154_s17, 4  ;;  %s1084_s19 = scalar_lea.vmem %s805_s14, 16  ;;  %s816_s18 = int_to_ptr.vmem [resolvable:$true] %s815_s18 }
 0x158   : > { %p1085_p7 = scmp.ne.s32.totalorder %s805_s14, %s1084_s19  ;;  %s1090_s20 = scalar_lea.vmem %s805_s14, 32 }
 0x159   : > { %p1091_p10 = scmp.lt.s32.totalorder %s805_s14, %s805_s14  ;;  %p1092_p11 = scmp.lt.s32.totalorder %s1090_s20, %s1084_s19 }
 0x15a   : > { %p1086_p8 = pnand %p1085_p7, %p1069_p6 }
 0x15b   : > { %p1093_p12 = por %p1092_p11, %p1091_p10 }
 0x15c   : > { %p1087_p9 = pneg %p1086_p8 }
 0x15e   : > { %p1094_p13 = pnand %p1093_p12, %p1087_p9 }
 0x160   : > { %1097 = shalt.err (!%p1094_p13)
}
 0x161   : > { %s1098_s23 = scalar_lea.hbm %s1566_s3, 16 }
 0x162   : > { %p1099_p0 = scmp.ne.s32.totalorder %s1566_s3, %s1098_s23  ;;  %p1104_p3 = scmp.lt.u32.totalorder %s1098_s23, %s1566_s3 }
 0x164   : > { %p1100_p1 = pnand %p1099_p0, %p1069_p6 }
 0x166   : > { %p1101_p2 = pneg %p1100_p1 }
 0x168   : > { %p1106_p4 = pnand %p1104_p3, %p1101_p2 }
 0x16a   : > { %1109 = shalt.err (!%p1106_p4)
}
 0x16b   : > { %1062 = dma.vmem_to_hbm [thread:$0]  (%p1069_p6), %s805_s14, 16, %s1566_s3, [#allocation5]  }
 0x16c   : > { %s1110_s30 = scalar_lea.vmem %s816_s18, 16  ;;  %s1116_s5 = scalar_lea.vmem %s816_s18, 32 }
 0x16d   : > { %p1111_p5 = scmp.ne.s32.totalorder %s816_s18, %s1110_s30  ;;  %p1117_p9 = scmp.lt.s32.totalorder %s816_s18, %s816_s18 }
 0x16e   : > { %p1118_p10 = scmp.lt.s32.totalorder %s1116_s5, %s1110_s30 }
 0x16f   : > { %p1112_p7 = pnand %p1111_p5, %p1069_p6 }
 0x170   : > { %p1119_p11 = por %p1118_p10, %p1117_p9 }
 0x171   : > { %p1113_p8 = pneg %p1112_p7 }
 0x173   : > { %p1120_p12 = pnand %p1119_p11, %p1113_p8 }
 0x175   : > { %1123 = shalt.err (!%p1120_p12)
}
 0x176   : > { %s1124_s8 = scalar_lea.hbm %s1567_s4, 16 }
 0x177   : > { %p1125_p13 = scmp.ne.s32.totalorder %s1567_s4, %s1124_s8  ;;  %p1130_p2 = scmp.lt.u32.totalorder %s1124_s8, %s1567_s4 }
 0x179   : > { %p1126_p0 = pnand %p1125_p13, %p1069_p6 }
 0x17b   : > { %p1127_p1 = pneg %p1126_p0 }
 0x17d   : > { %p1132_p3 = pnand %p1130_p2, %p1127_p1 }
 0x17f   : > { %1135 = shalt.err (!%p1132_p3)
}
 0x180   : > { %1064 = dma.vmem_to_hbm [thread:$0]  (%p1069_p6), %s816_s18, 16, %s1567_s4, [#allocation7]  }
 0x181   : > { %1141 = dma.done.wait (%p1069_p6), [#allocation5], 16  }
 0x182   : > { %1143 = vsyncadd (%p1069_p6), [#allocation5], 4294967280 }
 0x183   : > { %1145 = dma.done.wait (%p1069_p6), [#allocation7], 16  }
 0x184   : > { %1147 = vsyncadd (%p1069_p6), [#allocation7], 4294967280 }
 0x185 PF: > { %s17_s15 = sadd.s32 1, %s1150_s15  }
 0x186   : > { %p14_p4 = scmp.ge.s32.totalorder %s17_s15, 10  }
 0x188   :  { %16 = sbr.rel (!%p14_p4) target bundleno = 2 (0x2), region = 83 }
 0x18f   :  { %840 = vsyncpa [#allocation5], 1 }
 0x190   :  { %842 = vsyncpa [#allocation5 + $0x1], 1 }
 0x191   :  { %843 = vsyncpa [#allocation7], 1 }

</bundles_post_ra>
